<compile_context>
chip_gen: v7x
topology: tpu7x:2x2x1
jax: 0.10.0
libtpu: 0.0.40
codegen_flags: <defaults>
</compile_context>

<pallas_src>
import functools

import jax
import jax.numpy as jnp
from jax.experimental import pallas as pl
from jax.experimental.pallas import tpu as pltpu


def _cdiv(a, b):
    return -(-a // b)


# --------------------------------------------------------------------------
# Pallas kernel: integer-ratio nearest upsample (pure replication, no MXU).
# --------------------------------------------------------------------------
def _upsample_kernel(x_ref, o_ref, *, sh, sw):
    """x_ref: (CB, BH, W)  ->  o_ref: (CB, BH, sh*W*sw).

    Output layout (lane-dense): o[c, h, r*(W*sw) + w*sw + s] = x[c, h, w].
    The wrapper's free contiguous reshape (NC, H, sh*outW) -> (NC, H*sh, outW)
    then yields the standard nearest-neighbor upsample.
    """
    x = x_ref[...]
    cb, bh, w = x.shape

    # ---- column (width) replication via a transpose sandwich: the interleave
    #      happens as a sublane-axis broadcast+merge instead of a lane
    #      interleave.  XLU transposes hide under DMA for this mem-bound
    #      kernel; exact copy for any dtype. ----
    if sw > 1:
        xt = jnp.swapaxes(x, 1, 2)                                # (CB, W, BH)
        xt = jnp.broadcast_to(xt[:, :, None, :], (cb, w, sw, bh))
        xt = xt.reshape(cb, w * sw, bh)                           # (CB, W*sw, BH)
        y = jnp.swapaxes(xt, 1, 2)                                # (CB, BH, W*sw)
    else:
        y = x

    # ---- row (height) replication as a lane-axis concat: keeps the output
    #      store lane-dense (sh*W*sw lanes) with no sublane-interleave. ----
    if sh > 1:
        y = jnp.concatenate([y] * sh, axis=-1)                    # (CB, BH, sh*W*sw)

    o_ref[...] = y.astype(o_ref.dtype)


# --------------------------------------------------------------------------
# Tiling helpers.
# --------------------------------------------------------------------------
@functools.lru_cache(maxsize=None)
def _chip_budgets():
    """(output-tile byte budget, scoped vmem limit), generation-aware."""
    out_budget = 4 << 20          # v5e / v6e default (128 MiB VMEM, <=1.4 TB/s HBM)
    vmem_limit = 32 << 20
    try:
        info = pltpu.get_tpu_info()
        vmem_cap = getattr(info, "vmem_capacity_bytes", None)
        if vmem_cap is not None and vmem_cap <= (64 << 20):
            # v7x-class: 64 MiB VMEM/TC but ~3.2 TB/s HBM -> bigger tiles to
            # amortize per-step overhead; 2*(8 MiB out + <=4 MiB in) ~= 24 MiB
            # still fits the 32 MiB scoped limit (physical is 64 MiB/TC).
            out_budget = 8 << 20
            vmem_limit = 32 << 20
    except Exception:
        pass
    return out_budget, vmem_limit


def _sublane_align(dtype):
    """Sublane multiple for full vreg packing: 8 (4B), 16 (2B), 32 (1B)."""
    itemsize = jnp.dtype(dtype).itemsize
    return max(8, 32 // max(itemsize, 1))


def _pick_row_block(H, max_rows, align):
    """Row block: full H if it fits, else the largest sublane-aligned block
    within the budget (cdiv grid handles a partially masked tail block)."""
    if H <= max_rows:
        return H
    bh = (min(H, max_rows) // align) * align
    if bh >= align:
        return bh
    return min(H, align)


def _upsample_pallas_int(x, sh, sw):
    """Nearest upsample of NCHW `x` by integer factors (sh, sw) via Pallas."""
    N, C, H, W = x.shape
    outH, outW = H * sh, W * sw
    NC = N * C
    x3 = x.reshape(NC, H, W)                 # free reshape (contiguous)

    itemsize = jnp.dtype(x.dtype).itemsize
    align = _sublane_align(x.dtype)
    out_budget, vmem_limit = _chip_budgets()

    lane_out = sh * outW                     # lane-dense output row width
    out_row_bytes = lane_out * itemsize

    # Row block (input rows per step), sublane-aligned unless it is the full H.
    max_rows = max(1, out_budget // max(out_row_bytes, 1))
    BH = _pick_row_block(H, max_rows, align)

    # Channel block (flattened N*C slices per step), within the same budget.
    cb_cap = max(1, out_budget // max(BH * out_row_bytes, 1))
    CB = min(NC, cb_cap)

    # Grid balancing: aim for >=4 steps (pipeline steady state) and an even
    # step count on the NC axis (v7x shards "parallel" axes over 2 TCs).
    def n_steps(cb, bh):
        return _cdiv(NC, cb) * _cdiv(H, bh)

    while n_steps(CB, BH) < 4 and CB > 1:
        CB = _cdiv(CB, 2)
    while n_steps(CB, BH) < 4 and (BH // align) > 1:
        BH = align * max(1, (BH // align) // 2)
    nc_steps = _cdiv(NC, CB)
    if NC > 1 and nc_steps % 2 == 1:         # best-effort even split across TCs
        CB = _cdiv(NC, nc_steps + 1)

    grid = (_cdiv(NC, CB), _cdiv(H, BH))

    bytes_accessed = NC * H * W * itemsize + NC * outH * outW * itemsize
    cost = pl.CostEstimate(flops=0, transcendentals=0,
                           bytes_accessed=bytes_accessed)

    out3 = pl.pallas_call(
        functools.partial(_upsample_kernel, sh=sh, sw=sw),
        out_shape=jax.ShapeDtypeStruct((NC, H, lane_out), x.dtype),
        grid_spec=pltpu.PrefetchScalarGridSpec(
            num_scalar_prefetch=0,
            grid=grid,
            in_specs=[
                pl.BlockSpec((CB, BH, W), lambda i, j: (i, j, 0)),
            ],
            out_specs=pl.BlockSpec((CB, BH, lane_out), lambda i, j: (i, j, 0)),
        ),
        compiler_params=pltpu.CompilerParams(
            dimension_semantics=("parallel", "parallel"),
            vmem_limit_bytes=vmem_limit,
        ),
        cost_estimate=cost,
    )(x3)

    # Free contiguous reshapes: (NC, H, sh*outW) -> (NC, H*sh, outW) -> NCHW.
    return out3.reshape(N, C, outH, outW)


# --------------------------------------------------------------------------
# Pure-JAX nearest gather (reference + fallback for non-integer ratios).
# --------------------------------------------------------------------------
def _nearest_gather(x, outH, outW):
    """Matches PyTorch F.interpolate(mode='nearest'): src = floor(dst*in/out)."""
    N, C, H, W = x.shape
    src_h = jnp.clip(
        jnp.floor(jnp.arange(outH).astype(jnp.float32) * (H / outH)).astype(jnp.int32),
        0, H - 1)
    src_w = jnp.clip(
        jnp.floor(jnp.arange(outW).astype(jnp.float32) * (W / outW)).astype(jnp.int32),
        0, W - 1)
    return x[:, :, src_h, :][:, :, :, src_w]


# --------------------------------------------------------------------------
# Public wrapper mirroring the PyTorch module's forward.
# --------------------------------------------------------------------------
@functools.partial(jax.jit, static_argnames=("size", "scale_factor", "mode", "align_corners"))
def upsample(x, size=None, scale_factor=None, mode="nearest", align_corners=None):
    """Nearest-neighbor upsample of an NCHW tensor (Pallas TPU kernel)."""
    assert mode == "nearest", "only 'nearest' mode is implemented"
    # TODO(synk): bilinear / trilinear modes (fractional weights) are not implemented.
    if align_corners is not None:
        raise ValueError("align_corners cannot be set with mode='nearest'")
    assert x.ndim == 4, "only NCHW (4-D) inputs are supported"
    N, C, H, W = x.shape

    if size is not None:
        outH, outW = (size, size) if isinstance(size, int) else tuple(size)
    elif scale_factor is not None:
        sf = scale_factor
        sfh, sfw = (sf, sf) if not isinstance(sf, (tuple, list)) else tuple(sf)
        outH, outW = int(H * sfh), int(W * sfw)
    else:
        raise ValueError("either size or scale_factor must be given")

    if outH == H and outW == W:
        return x                                  # identity: no copy needed

    if outH % H == 0 and outW % W == 0:
        return _upsample_pallas_int(x, outH // H, outW // W)

    # TODO(synk): non-integer output/input ratios fall back to a pure-JAX
    # gather (a Pallas path would need a scalar-prefetched src-index table).
    return _nearest_gather(x, outH, outW)


if __name__ == "__main__":
    key = jax.random.PRNGKey(0)
    N, C, H, W = 2, 4, 16, 16
    x = jax.random.normal(key, (N, C, H, W), dtype=jnp.float32)

    # scale_factor = 2 (the common integer case -> Pallas kernel path)
    out = jax.block_until_ready(upsample(x, scale_factor=2, mode="nearest"))
    ref = _nearest_gather(x, H * 2, W * 2)
    assert out.shape == (N, C, H * 2, W * 2), out.shape
    assert out.dtype == x.dtype
    assert jnp.array_equal(out, ref), "mismatch vs reference nearest upsample (scale 2)"

    # anisotropic integer scale (2, 4) -> Pallas kernel path with sh != sw
    out2 = jax.block_until_ready(upsample(x, scale_factor=(2, 4), mode="nearest"))
    ref2 = _nearest_gather(x, H * 2, W * 4)
    assert out2.shape == (N, C, H * 2, W * 4), out2.shape
    assert jnp.array_equal(out2, ref2), "mismatch vs reference nearest upsample (scale 2,4)"

    # packed dtype (bf16) exercises the dtype-aware sublane alignment
    xb = x.astype(jnp.bfloat16)
    out3 = jax.block_until_ready(upsample(xb, scale_factor=2, mode="nearest"))
    ref3 = _nearest_gather(xb, H * 2, W * 2)
    assert out3.dtype == jnp.bfloat16
    assert jnp.array_equal(out3, ref3), "mismatch vs reference nearest upsample (bf16)"

    print("KERNEL_OK")
</pallas_src>

<mosaic_0001>
module attributes {stable_mosaic.version = 11 : i64} {
  func.func @_upsample_kernel(%arg0: i32, %arg1: i32, %arg2: memref<2x16x16xf32, #tpu.memory_space<vmem>>, %arg3: memref<2x16x64xf32, #tpu.memory_space<vmem>>) attributes {dimension_semantics = [#tpu.dimension_semantics<parallel>, #tpu.dimension_semantics<parallel>], iteration_bounds = array<i64: 4, 1>, scalar_prefetch = 0 : i64, scratch_operands = 0 : i64, tpu.core_type = #tpu.core_type<tc>, window_params = [{transform_indices = @transform_0, window_bounds = array<i64: 2, 16, 16>}, {transform_indices = @transform_1, window_bounds = array<i64: 2, 16, 64>}]} {
    %c0 = arith.constant 0 : index
    %c0_0 = arith.constant 0 : index
    %c0_1 = arith.constant 0 : index
    %0 = vector.load %arg2[%c0, %c0_0, %c0_1] : memref<2x16x16xf32, #tpu.memory_space<vmem>>, vector<2x16x16xf32>
    %1 = tpu.transpose %0, [0, 2, 1] : vector<2x16x16xf32> -> vector<2x16x16xf32>
    %2 = vector.shape_cast %1 : vector<2x16x16xf32> to vector<2x16x1x16xf32>
    %3 = vector.shape_cast %2 : vector<2x16x1x16xf32> to vector<2x16x1x16xf32>
    %4 = vector.broadcast %3 : vector<2x16x1x16xf32> to vector<2x16x2x16xf32>
    %5 = vector.shape_cast %4 : vector<2x16x2x16xf32> to vector<2x32x16xf32>
    %6 = tpu.transpose %5, [0, 2, 1] : vector<2x32x16xf32> -> vector<2x16x32xf32>
    %7 = tpu.concatenate %6, %6 in 2 : vector<2x16x32xf32>, vector<2x16x32xf32> -> vector<2x16x64xf32>
    %c0_2 = arith.constant 0 : index
    %c0_3 = arith.constant 0 : index
    %c0_4 = arith.constant 0 : index
    %8 = vector.load %arg3[%c0_2, %c0_3, %c0_4] : memref<2x16x64xf32, #tpu.memory_space<vmem>>, vector<2x16x64xf32>
    tpu.vector_store %arg3[%c0_2, %c0_3, %c0_4], %7 {strides = array<i32>} : memref<2x16x64xf32, #tpu.memory_space<vmem>>, vector<2x16x64xf32>,
    return
  }
  func.func @transform_0(%arg0: i32, %arg1: i32) -> (i32, i32, i32) {
    %c0_i32 = arith.constant 0 : i32
    %c0_i32_0 = arith.constant 0 : i32
    return %arg0, %arg1, %c0_i32 : i32, i32, i32
  }
  func.func @transform_1(%arg0: i32, %arg1: i32) -> (i32, i32, i32) {
    %c0_i32 = arith.constant 0 : i32
    %c0_i32_0 = arith.constant 0 : i32
    return %arg0, %arg1, %c0_i32 : i32, i32, i32
  }
}

</mosaic_0001>

<bundles_post_ra>
// kernel: upsample.1
= control target key start
LH: loop header
LB: loop body
LE: loop exit
PB: predicated region body
PF: predicated region fallthrough
CT: control target
= control target key end

     0   :  { %6 = vsyncpa [#allocation3], 0  ;;  %s1319_s0 = inlined_call_operand.hbm [shape: f32[8,16,16], index: 0, kind: input, shape index: {}]   ;;  %s1320_s1 = inlined_call_operand.vmem [shape: f32[8,16,64], index: 1, kind: output, shape index: {}]  }
   0x1   :  { %8 = vsyncpa [#allocation3 + $0x1], 0  ;;  %s1075_s6 = smov 0   ;;  %s1077_s7 = smov 0  }
   0x2   :  { %s1079_s8 = smov 0   ;;  %s1081_s9 = smov 0  }
   0x3   :  { %s1083_s10 = smov 0   ;;  %s1085_s11 = smov 0  }
   0x4 LB: > { %s898_s12 = sadd.s32 4294967295, %s1057_s11   ;;  %s26_s13 = sadd.s32 1, %s1053_s10  ;;  %s1057_s11 = sphi %s1085_s11, %s14_s11   ;;  %s1053_s10 = sphi %s1083_s10, %s1328_s10   ;;  %s1049_s9 = sphi %s1081_s9, %s1327_s9   ;;  %s1045_s8 = sphi %s1079_s8, %s1326_s8   ;;  %s1041_s7 = sphi %s1077_s7, %s1325_s7   ;;  %s1037_s6 = sphi %s1075_s6, %s1324_s6  }
   0x5   : > { %p28_p0 = scmp.ge.s32.totalorder %s26_s13, 4  ;;  %s35_s14 = sadd.s32 1, %s1045_s8 }
   0x6   : > { %p42_p1 = scmp.ne.s32.totalorder %s1045_s8, %s1041_s7  ;;  %p43_p2 = scmp.eq.s32.totalorder %s1057_s11, 0 }
   0x7   : > { %s1330_s13 = smov (%p28_p0, %s26_s13), 0  ;;  %p48_p4 = scmp.ne.s32.totalorder %s1041_s7, %s1037_s6 }
   0x8   : > { %p1111_p3 = por %p43_p2, %p42_p1  ;;  %s30_s16 = ssub.s32 %s1053_s10, %s1330_s13 }
   0x9   : > { %p49_p5 = scmp.eq.s32.totalorder %s898_s12, 0  ;;  %p33_p6 = scmp.eq.s32.totalorder %s30_s16, 0 }
   0xa   : > { %p922_p8 = scmp.lt.s32.totalorder %s1057_s11, 4  ;;  %s100_s19 = sand.u32 1, %s1045_s8  }
   0xb   : > { %p1118_p7 = por %p49_p5, %p48_p4  ;;  %s914_s20 = sshll.u32 %s1053_s10, 9 }
   0xc   : > { %s1124_s18 = scalar_select %p33_p6, %s1045_s8, %s35_s14  }
   0xd   : > { %s902_s21 = sshll.u32 %s100_s19, 5  ;;  %s1131_s24 = scalar_lea.hbm %s1319_s0, %s914_s20 }
   0xe   : > { %s104_s25 = scalar_lea.vmem [#allocation2], %s902_s21  ;;  %p1135_p9 = pnand %p922_p8, %p1111_p3 }
   0xf   : > { %s114_s26 = sshll.u32 %s104_s25, 4  ;;  %s1141_s28 = scalar_lea.sflag [#allocation3], %s100_s19  ;;  %s1139_s26 = int_to_ptr.vmem [resolvable:$true] %s114_s26 }
  0x10   : > { %s977_s29 = scalar_lea.hbm %s1131_s24, 512  ;;  %p979_p11 = pneg %p1135_p9 }
  0x11   : > { %p978_p10 = scmp.ne.s32.totalorder %s1131_s24, %s977_s29  ;;  %s982_s3 = scalar_lea.hbm %s1319_s0, 2048 }
  0x12   : > { %p983_p0 = scmp.lt.u32.totalorder %s1131_s24, %s1319_s0  ;;  %p984_p1 = scmp.lt.u32.totalorder %s982_s3, %s977_s29 }
  0x13   : > { %p980_p12 = pnand %p979_p11, %p978_p10  ;;  %p986_p3 = scmp.lt.u32.totalorder %s977_s29, %s1131_s24 }
  0x14   : > { %p985_p2 = por %p984_p1, %p983_p0 }
  0x15   : > { %p981_p13 = pneg %p980_p12 }
  0x16   : > { %p987_p4 = por %p986_p3, %p985_p2 }
  0x18   : > { %p988_p5 = pnand %p987_p4, %p981_p13 }
  0x1a   : > { %991 = shalt.err (!%p988_p5)
}
  0x1b   : > { %s992_s6 = scalar_lea.vmem %s1139_s26, 512  ;;  %s1059_s12 = smov [#allocation2]  }
  0x1c   : > { %p993_p6 = scmp.ne.s32.totalorder %s1139_s26, %s992_s6  ;;  %s997_s14 = sshll.u32 %s1059_s12, 4  ;;  %s998_s14 = int_to_ptr.vmem [resolvable:$false] %s997_s14 }
  0x1d   : > { %s999_s15 = scalar_lea.vmem %s998_s14, 1024  ;;  %p1000_p12 = scmp.lt.s32.totalorder %s1139_s26, %s998_s14 }
  0x1e   : > { %p995_p8 = pnand %p993_p6, %p979_p11  ;;  %p1001_p0 = scmp.lt.s32.totalorder %s999_s15, %s992_s6 }
  0x20   : > { %p996_p10 = pneg %p995_p8  ;;  %p1002_p1 = por %p1001_p0, %p1000_p12 }
  0x22   : > { %p1003_p2 = pnand %p1002_p1, %p996_p10 }
  0x24   : > { %1006 = shalt.err (!%p1003_p2)
}
  0x25   : > { %s1060_s16 = smov 128   ;;  %s1061_s19 = smov 8  }
  0x26   : > { %921 = dma.hbm_to_vmem [thread:$0]  (!%p1135_p9), %s1131_s24, 512, %s1139_s26, %s1141_s28, %s1060_s16, %s1060_s16, %s1061_s19  }
  0x27   : > { %p906_p11 = scmp.ge.s32.totalorder %s1057_s11, 1  ;;  %p122_p13 = scmp.lt.s32.totalorder %s1057_s11, 5 }
  0x29   : > { %p123_p3 = pnand %p906_p11, %p122_p13 }
  0x2a   : > { %s128_s20 = sand.u32 (!%p123_p3), 1, %s1041_s7  }
  0x2b   : > { %126 = sbr.rel (%p123_p3) target bundleno = 464 (0x1d0), region = 24  ;;  %s907_s21 = sshll.u32 (!%p123_p3), %s128_s20, 5 }
  0x2c   : > { %s129_s22 = scalar_lea.sflag (!%p123_p3), [#allocation3], %s128_s20  ;;  %s132_s23 = scalar_lea.vmem (!%p123_p3), [#allocation2], %s907_s21 }
  0x32   : > { %1032 = dma.done.wait (%p1118_p7), %s129_s22, 512  }
  0x33   : > { %1034 = vsyncadd (%p1118_p7), %s129_s22, 4294966784  ;;  %v172_v0 = vld [vmem:[%s132_s23 + $0x10] sm:$0xff]  ;;  %v170_v1 = vld [vmem:[%s132_s23] sm:$0xff]  ;;  %v1062_v4 = vmov 1966171168   ;;  %v246_v6 = vlaneseq  ;;  %s1064_s17 = smov 32  }
  0x34   : > { %206 = vxpose.xlu1.b32.start [1/2] (short) (narrow) %v172_v0, 16  ;;  %174 = vxpose.xlu0.b32.start [1/2] (short) (narrow) %v170_v1, 16  ;;  %v173_v2 = vld [vmem:[%s132_s23 + $0x18] sm:$0xff]  ;;  %v171_v3 = vld [vmem:[%s132_s23 + $0x8] sm:$0xff]  ;;  %v244_v5 = vunpack.c.l.s4 %v1062_v4  ;;  %v1063_v12 = vmov 1983009808  }
  0x35   : > { %v247_v8 = vshrl.u32 %v246_v6, 7  ;;  %v569_v13 = vunpack.c.l.s4 %v1063_v12  ;;  %s908_s24 = sshll.u32 %s1049_s9, 1  ;;  %vm790_vm0 = vcmask 261120   ;;  %vm795_vm1 = vcmask 523264  }
  0x36   : > { %v245_v7 = vunpack.c.0.s8 %v244_v5  ;;  %p160_p7 = scmp.lt.s32.totalorder %s908_s24, 7 }
  0x37   : > { %v1182_v21 = vsub.s32 0, %v247_v8  ;;  %v570_v24 = vunpack.c.0.s8 %v569_v13 }
  0x38   : > { %207 = vxpose.xlu1.b32.end [2/2] (short) (narrow) %v173_v2, 16  ;;  %175 = vxpose.xlu0.b32.end [2/2] (short) (narrow) %v171_v3, 16  ;;  %v1176_v9 = vsub.s32 %v245_v7, %v247_v8  ;;  %s1332_s24 = smov (!%p160_p7, %s908_s24), 7 }
  0x39   : > { %v1207_v39 = vsub.s32 %v570_v24, %v247_v8  ;;  %s915_s25 = sshll.u32 %s1332_s24, 4 }
  0x3a   : > { %s167_s28 = scalar_lea.vmem %s1320_s1, %s915_s25 }
  0xb4   : > { %v222_v10 = vpop.trf.xlu1  ;;  %v190_v11 = vpop.trf.xlu0 }
  0xb5   : > { %v340_v14 = vcombine.high %v222_v10, %v222_v10  ;;  %v347_v15 = vrot.slane %v222_v10, %v1176_v9  ;;  %v242_v16 = vcombine.high %v190_v11, %v190_v11  ;;  %v249_v17 = vrot.slane %v190_v11, %v1176_v9 }
  0xb7   : > { %v354_v18 = vrot.slane %v340_v14, %v1176_v9  ;;  %v355_v19 = vcombine.high %v347_v15, %v347_v15  ;;  %v256_v20 = vrot.slane %v242_v16, %v1176_v9  ;;  %v363_v22 = vrot.slane %v347_v15, %v1176_v9 }
  0xb8   : > { %v257_v23 = vcombine.high %v249_v17, %v249_v17  ;;  %v1190_v28 = vrot.slane %v249_v17, %v1176_v9  ;;  %v223_v37 = vpop.trf.xlu1  ;;  %v191_v38 = vpop.trf.xlu0 }
  0xb9   : > { %v356_v25 = vcombine.high %v354_v18, %v354_v18  ;;  %v1186_v26 = vrot.slane %v354_v18, %v1176_v9  ;;  %v377_v27 = vrot.slane %v355_v19, %v1176_v9  ;;  %v258_v29 = vcombine.high %v256_v20, %v256_v20 }
  0xba   : > { %v1193_v30 = vrot.slane %v256_v20, %v1176_v9  ;;  %v1196_v31 = vrot.slane %v257_v23, %v1176_v9  ;;  %v385_v34 = vcombine.high %v363_v22, %v363_v22  ;;  %v505_v35 = vrot.slane %v363_v22, %v1182_v21 }
  0xbb   : > { %v1199_v32 = vrot.slane %v356_v25, %v1176_v9  ;;  %v386_v33 = vcombine.high %v1186_v26, %v1186_v26  ;;  %v1205_v36 = vrot.slane %v258_v29, %v1176_v9  ;;  %v387_v40 = vcombine.high %v377_v27, %v377_v27 }
  0xbc   : > { %v521_v41 = vrot.slane %v1186_v26, %v1182_v21  ;;  %v287_v42 = vcombine.high %v1190_v28, %v1190_v28  ;;  %v288_v43 = vcombine.high %v1193_v30, %v1193_v30  ;;  %v289_v47 = vcombine.high %v1196_v31, %v1196_v31 }
  0xbd   : > { %v388_v44 = vcombine.high %v1199_v32, %v1199_v32  ;;  %v525_v45 = vrot.slane %v1199_v32, %v1182_v21  ;;  %v1220_v46 = vrot.slane %v386_v33, %v1182_v21  ;;  %v389_v48 = vcombine.high %v223_v37, %v223_v37 }
  0xbe   : > { %v396_v49 = vrot.slane %v223_v37, %v1176_v9  ;;  %v291_v50 = vcombine.high %v191_v38, %v191_v38  ;;  %v298_v51 = vrot.slane %v191_v38, %v1176_v9  ;;  %v290_v52 = vcombine.high %v1205_v36, %v1205_v36 }
  0xbf   : > { %v441_v53 = vrot.slane %v1190_v28, %v1182_v21  ;;  %v457_v54 = vrot.slane %v1193_v30, %v1182_v21  ;;  %v509_v55 = vrot.slane %v377_v27, %v1182_v21  ;;  %v403_v56 = vrot.slane %v389_v48, %v1176_v9 }
  0xc0   : > { %v404_v57 = vcombine.high %v396_v49, %v396_v49  ;;  %v412_v58 = vrot.slane %v396_v49, %v1176_v9  ;;  %v305_v59 = vrot.slane %v291_v50, %v1176_v9  ;;  %v306_v60 = vcombine.high %v298_v51, %v298_v51 }
  0xc1   : > { %v314_v61 = vrot.slane %v298_v51, %v1176_v9  ;;  %v513_v62 = vrot.slane %v385_v34, %v1182_v21  ;;  %v517_v63 = vrot.slane %v387_v40, %v1182_v21  ;;  %v405_v0 = vcombine.high %v403_v56, %v403_v56 }
  0xc2   : > { %v1240_v1 = vrot.slane %v403_v56, %v1176_v9  ;;  %v426_v2 = vrot.slane %v404_v57, %v1176_v9  ;;  %v434_v3 = vcombine.high %v412_v58, %v412_v58  ;;  %v537_v4 = vrot.slane %v412_v58, %v1182_v21 }
  0xc3   : > { %v307_v5 = vcombine.high %v305_v59, %v305_v59  ;;  %v1245_v6 = vrot.slane %v305_v59, %v1176_v9  ;;  %v328_v7 = vrot.slane %v306_v60, %v1176_v9  ;;  %v433_v8 = vrot.slane %v405_v0, %v1176_v9 }
  0xc4   : > { %v435_v10 = vcombine.high %v1240_v1, %v1240_v1  ;;  %v436_v11 = vcombine.high %v426_v2, %v426_v2  ;;  %v541_v12 = vrot.slane %v426_v2, %v1182_v21  ;;  %v461_v13 = vrot.slane %v1205_v36, %v1182_v21 }
  0xc5   : > { %v465_v14 = vrot.slane %v288_v43, %v1182_v21  ;;  %v335_v15 = vrot.slane %v307_v5, %v1176_v9  ;;  %v336_v16 = vcombine.high %v314_v61, %v314_v61  ;;  %v545_v17 = vrot.slane %v434_v3, %v1182_v21 }
  0xc6   : > { %v634_v18 = vcombine.low %v505_v35, %v509_v55  ;;  %v635_v19 = vcombine.low %v513_v62, %v517_v63  ;;  %v445_v20 = vrot.slane %v1196_v31, %v1182_v21  ;;  %v437_v22 = vcombine.high %v433_v8, %v433_v8 }
  0xc7   : > { %v549_v23 = vrot.slane %v436_v11, %v1182_v21  ;;  %v553_v24 = vrot.slane %v1240_v1, %v1182_v21  ;;  %v557_v25 = vrot.slane %v433_v8, %v1182_v21  ;;  %v561_v26 = vrot.slane %v435_v10, %v1182_v21 }
  0xc8   : > { %v668_v27 = vcombine.low %v537_v4, %v541_v12  ;;  %v337_v9 = vcombine.high %v1245_v6, %v1245_v6  ;;  %v338_v28 = vcombine.high %v328_v7, %v328_v7  ;;  %v339_v29 = vcombine.high %v335_v15, %v335_v15 }
  0xc9   : > { %v473_v30 = vrot.slane %v314_v61, %v1182_v21  ;;  %v477_v31 = vrot.slane %v328_v7, %v1182_v21  ;;  %v481_v32 = vrot.slane %v336_v16, %v1182_v21  ;;  %v642_v33 = vrot.slane %v634_v18, %v1207_v39 }
  0xca   : > { %v649_v34 = vrot.slane %v635_v19, %v1207_v39  ;;  %v449_v35 = vrot.slane %v287_v42, %v1182_v21  ;;  %v453_v36 = vrot.slane %v289_v47, %v1182_v21  ;;  %v566_v37 = vcombine.low %v441_v53, %v445_v20 }
  0xcb   : > { %v533_v38 = vrot.slane %v388_v44, %v1182_v21  ;;  %v651_v40 = vcombine.low %v521_v41, %v525_v45  ;;  %v469_v43 = vrot.slane %v290_v52, %v1182_v21  ;;  %v485_v48 = vrot.slane %v338_v28, %v1182_v21 }
  0xcc   : > { %v489_v49 = vrot.slane %v1245_v6, %v1182_v21  ;;  %v650_v50 = vcombine.low %v642_v33, %v649_v34  ;;  %v567_v51 = vcombine.low %v449_v35, %v453_v36  ;;  %v493_v55 = vrot.slane %v335_v15, %v1182_v21 }
  0xcd   : > { %v652_v56 = vcombine.low %v1220_v46, %v533_v38  ;;  %v584_v42 = vcombine.low %v465_v14, %v469_v43  ;;  %v669_v57 = vcombine.low %v545_v17, %v549_v23  ;;  %v497_v47 = vrot.slane %v337_v9, %v1182_v21 }
  0xce   : > { %742 = vxpose.xlu1.b32.start [1/4] (short) (narrow) %v650_v50, 16  ;;  %v574_v41 = vrot.slane %v566_v37, %v1207_v39  ;;  %v581_v44 = vrot.slane %v567_v51, %v1207_v39  ;;  %v583_v45 = vcombine.low %v457_v54, %v461_v13  ;;  %v600_v52 = vcombine.low %v473_v30, %v477_v31 }
  0xcf   : > { %v659_v53 = vrot.slane %v651_v40, %v1207_v39  ;;  %v666_v58 = vrot.slane %v652_v56, %v1207_v39  ;;  %v676_v59 = vrot.slane %v668_v27, %v1207_v39  ;;  %v598_v46 = vrot.slane %v584_v42, %v1207_v39 }
  0xd0   : > { %v582_v60 = vcombine.low %v574_v41, %v581_v44  ;;  %v601_v61 = vcombine.low %v481_v32, %v485_v48  ;;  %v565_v62 = vrot.slane %v437_v22, %v1182_v21  ;;  %v683_v0 = vrot.slane %v669_v57, %v1207_v39 }
  0xd1   : > { %v667_v63 = vcombine.low %v659_v53, %v666_v58  ;;  %v685_v1 = vcombine.low %v553_v24, %v557_v25  ;;  %v501_v2 = vrot.slane %v339_v29, %v1182_v21  ;;  %v591_v54 = vrot.slane %v583_v45, %v1207_v39 }
  0xd2   : > { %710 = vxpose.xlu0.b32.start [1/4] (short) (narrow) %v582_v60, 16  ;;  %v686_v3 = vcombine.low %v561_v26, %v565_v62  ;;  %v608_v4 = vrot.slane %v600_v52, %v1207_v39  ;;  %v615_v6 = vrot.slane %v601_v61, %v1207_v39  ;;  %v617_v7 = vcombine.low %v489_v49, %v493_v55 }
  0xd3   : > { %743 = vxpose.xlu1.b32.cont [2/4] (short) (narrow) %v667_v63, 16  ;;  %v599_v5 = vcombine.low %v591_v54, %v598_v46  ;;  %v618_v8 = vcombine.low %v497_v47, %v501_v2  ;;  %v684_v10 = vcombine.low %v676_v59, %v683_v0  ;;  %v693_v11 = vrot.slane %v685_v1, %v1207_v39 }
  0xd4   : > { %v700_v12 = vrot.slane %v686_v3, %v1207_v39  ;;  %v616_v21 = vcombine.low %v608_v4, %v615_v6  ;;  %v625_v13 = vrot.slane %v617_v7, %v1207_v39 }
  0xd5   : > { %v632_v14 = vrot.slane %v618_v8, %v1207_v39 }
  0xd6   : > { %711 = vxpose.xlu0.b32.cont [2/4] (short) (narrow) %v599_v5, 16  ;;  %v701_v15 = vcombine.low %v693_v11, %v700_v12 }
  0xd7   : > { %744 = vxpose.xlu1.b32.cont [3/4] (short) (narrow) %v684_v10, 16  ;;  %v633_v16 = vcombine.low %v625_v13, %v632_v14 }
  0xda   : > { %712 = vxpose.xlu0.b32.cont [3/4] (short) (narrow) %v616_v21, 16 }
  0xdb   : > { %745 = vxpose.xlu1.b32.end [4/4] (short) (narrow) %v701_v15, 16 }
  0xde   : > { %713 = vxpose.xlu0.b32.end [4/4] (short) (narrow) %v633_v16, 16 }
 0x14f   : > { %v758_v17 = vpop.trf.xlu1 }
 0x150   : > { %782 = vrot.lane.b32.xlu1 %v758_v17, %s1064_s17 }
 0x152   : > { %v726_v18 = vpop.trf.xlu0 }
 0x153   : > { %778 = vrot.lane.b32.xlu0 %v726_v18, %s1064_s17  ;;  %v759_v20 = vpop.trf.xlu1 }
 0x156   : > { %v727_v19 = vpop.trf.xlu0 }
 0x157   : > { %780 = vrot.lane.b32.xlu1 %v727_v19, %s1064_s17 }
 0x15b   : > { %784 = vrot.lane.b32.xlu1 %v759_v20, %s1064_s17 }
 0x1c2   : > { %v783_v39 = vpop.permute.xlu1 %782 }
 0x1c3   : > { %v793_v22 = vsel %vm790_vm0, %v758_v17, %v783_v39 }
 0x1c4   : > { %798 = vst.msk [vmem:[%s167_s28 + $0x10] sm:$0xff] %vm795_vm1, %v793_v22 }
 0x1c5   : > { %v779_v23 = vpop.permute.xlu0 %778 }
 0x1c6   : > { %v791_v24 = vsel %vm790_vm0, %v726_v18, %v779_v23 }
 0x1c7   : > { %796 = vst.msk [vmem:[%s167_s28] sm:$0xff] %vm795_vm1, %v791_v24 }
 0x1c9   : > { %v781_v25 = vpop.permute.xlu1 %780 }
 0x1ca   : > { %v792_v26 = vsel %vm790_vm0, %v727_v19, %v781_v25 }
 0x1cb   : > { %797 = vst.msk [vmem:[%s167_s28 + $0x8] sm:$0xff] %vm795_vm1, %v792_v26 }
 0x1cd   : > { %v785_v27 = vpop.permute.xlu1 %784 }
 0x1ce   : > { %v794_v9 = vsel %vm790_vm0, %v759_v20, %v785_v27 }
 0x1cf   : > { %799 = vst.msk [vmem:[%s167_s28 + $0x18] sm:$0xff] %vm795_vm1, %v794_v9 }
 0x1d0 PF: > { %s14_s11 = sadd.s32 1, %s1057_s11   ;;  %s1324_s6 = smov %s1041_s7 }
 0x1d1   : > { %p11_p9 = scmp.ge.s32.totalorder %s14_s11, 6   ;;  %s1325_s7 = smov %s1045_s8 }
 0x1d2   : > { %s1326_s8 = smov %s1124_s18  ;;  %s1327_s9 = smov %s1053_s10 }
 0x1d3   : > { %s1328_s10 = smov %s1330_s13  ;;  %13 = sbr.rel (!%p11_p9) target bundleno = 4 (0x4), region = 64 }
 0x1da   :  { %833 = vsyncpa [#allocation3], 1 }
 0x1db   :  { %835 = vsyncpa [#allocation3 + $0x1], 1 }

</bundles_post_ra>
